<compile_context>
chip_gen: v7x
topology: tpu7x:2x2x1
jax: 0.10.0
libtpu: 0.0.40
codegen_flags: <defaults>
</compile_context>

<pallas_src>
import math

import jax
import jax.numpy as jnp
from jax.experimental import pallas as pl
from jax.experimental.pallas import tpu as pltpu

_LANE = 128
_GB_ROW_BYTES = _LANE * 4  # a (rows, 2) f32 block pads to 128 lanes in VMEM


# ----------------------------------------------------------------------------
# Stage 1: gamma/beta MLPs (tiny, single VMEM block, no grid)
# ----------------------------------------------------------------------------
def _gamma_beta_kernel(se_ref, w1g_ref, b1g_ref, w2g_ref, b2g_ref,
                       w1b_ref, b1b_ref, w2b_ref, b2b_ref,
                       gamma_ref, beta_ref):
    se = se_ref[...].astype(jnp.float32)
    hg = jnp.maximum(
        jnp.dot(se, w1g_ref[...], preferred_element_type=jnp.float32) + b1g_ref[...], 0.0)
    gamma_ref[...] = jnp.dot(hg, w2g_ref[...], preferred_element_type=jnp.float32) + b2g_ref[...]
    hb = jnp.maximum(
        jnp.dot(se, w1b_ref[...], preferred_element_type=jnp.float32) + b1b_ref[...], 0.0)
    beta_ref[...] = jnp.dot(hb, w2b_ref[...], preferred_element_type=jnp.float32) + b2b_ref[...]


# ----------------------------------------------------------------------------
# Stage 2: streaming per-channel affine (HBM-bandwidth bound, gridded)
# ----------------------------------------------------------------------------
def _affine_stream_kernel(gb_ref, x_ref, out_ref):
    # gb: (tile_rows, 2) f32, fetched once per row tile; x/out: (tile_rows, col_tile).
    gamma = gb_ref[:, 0:1]
    beta = gb_ref[:, 1:2]
    out_ref[...] = (gamma * x_ref[...].astype(jnp.float32) + beta).astype(out_ref.dtype)


def _round_down(v: int, m: int) -> int:
    return max(m, (v // m) * m)


def _round_up(v: int, m: int) -> int:
    return ((v + m - 1) // m) * m


def _choose_tiles(rows: int, cols: int, itemsize: int,
                  budget_bytes: int = 4 << 20):
    """Pick (tile_rows, col_tile) for the streaming affine.

    * tile_rows is a multiple of the dtype's sublane granule (f32:8, bf16:16,
      int8/fp8:32) unless it covers the full row extent.
    * col_tile is the full spatial extent when a granule-row slab fits the
      per-block budget, otherwise a multiple of 128 lanes.
    * one x block + the lane-padded gamma/beta block stay <= budget_bytes, so
      double-buffered in + out blocks fit the 32 MiB scoped VMEM limit on all
      of v5e/v6e/v7x (v5e/v6e could raise the budget, but gains are ~1-3%).
    """
    granule = max(8, 32 // max(1, itemsize))            # dtype-aware sublane granule

    if cols * itemsize * granule + granule * _GB_ROW_BYTES <= budget_bytes:
        col_tile = cols                                  # full extent -> always legal
        tile_rows = budget_bytes // (cols * itemsize + _GB_ROW_BYTES)
        tile_rows = _round_down(tile_rows, granule)
        if tile_rows >= rows:
            tile_rows = rows                             # full extent -> always legal
    else:
        tile_rows = min(granule, rows)
        col_tile = (budget_bytes - tile_rows * _GB_ROW_BYTES) // max(1, tile_rows * itemsize)
        col_tile = _round_down(col_tile, _LANE)
        col_tile = min(col_tile, cols)

    # v7x megacore: make sure the grid has >= 2 steps so both TensorCores get work.
    if pl.cdiv(rows, tile_rows) * pl.cdiv(cols, col_tile) < 2:
        if tile_rows == rows and rows >= 2 * granule:
            tile_rows = _round_down(_round_up(rows // 2, granule), granule)
        elif col_tile == cols and cols >= 2 * _LANE:
            col_tile = _round_down(_round_up(cols // 2, _LANE), _LANE)

    return tile_rows, col_tile


def affine_block(x, sentence_embed, params, *, donate_x: bool = False,
                 budget_bytes: int = 4 << 20):
    """x: (B, C, H, W) NCHW; sentence_embed: (B, input_dim); params: raw MLP weights."""
    B, C, H, W = x.shape
    HW = H * W
    rows = B * C

    # ---- stage 1: gamma/beta MLPs (tiny) -------------------------------------
    vmem = pl.BlockSpec(memory_space=pltpu.MemorySpace.VMEM)
    gamma, beta = pl.pallas_call(
        _gamma_beta_kernel,
        out_shape=(jax.ShapeDtypeStruct((B, C), jnp.float32),
                   jax.ShapeDtypeStruct((B, C), jnp.float32)),
        in_specs=[vmem] * 9,
        out_specs=(vmem, vmem),
    )(sentence_embed,
      params["w1g"], params["b1g"], params["w2g"], params["b2g"],
      params["w1b"], params["b1b"], params["w2b"], params["b2b"])

    # pack gamma|beta per (b, c) row: (rows, 2) f32 (tiny XLA glue, B*C*2 floats)
    gb = jnp.stack([gamma.reshape(-1), beta.reshape(-1)], axis=-1)

    # ---- stage 2: stream x through VMEM in lane-dense blocks -----------------
    x2d = x.reshape(rows, HW)
    # keep the store path lane-dense: pad ragged spatial extents up to 128 lanes
    HW_pad = HW if HW % _LANE == 0 else _round_up(HW, _LANE)
    if HW_pad != HW:
        x2d = jnp.pad(x2d, ((0, 0), (0, HW_pad - HW)))

    itemsize = jnp.dtype(x.dtype).itemsize
    tile_rows, col_tile = _choose_tiles(rows, HW_pad, itemsize, budget_bytes)
    grid = (pl.cdiv(rows, tile_rows), pl.cdiv(HW_pad, col_tile))

    aliases = {1: 0} if (donate_x and HW_pad == HW) else {}

    out2d = pl.pallas_call(
        _affine_stream_kernel,
        out_shape=jax.ShapeDtypeStruct((rows, HW_pad), x.dtype),
        grid=grid,
        in_specs=[
            # gamma/beta column pair: re-fetched only when the row tile changes
            pl.BlockSpec((tile_rows, 2), lambda i, j: (i, 0)),
            pl.BlockSpec((tile_rows, col_tile), lambda i, j: (i, j)),
        ],
        out_specs=pl.BlockSpec((tile_rows, col_tile), lambda i, j: (i, j)),
        input_output_aliases=aliases,
        compiler_params=pltpu.CompilerParams(
            dimension_semantics=("parallel", "parallel"),  # shard across TCs on v7x
            vmem_limit_bytes=32 * 1024 * 1024,             # safe on v5e/v6e/v7x
        ),
    )(gb, x2d)

    if HW_pad != HW:
        out2d = out2d[:, :HW]
    return out2d.reshape(B, C, H, W)


# ----------------------------------------------------------------------------
# Parameter init (Xavier-normal weights, zero biases) matching the PyTorch code
# ----------------------------------------------------------------------------
def init_affine_block_params(key, input_dim, hidden_dim, output_dim):
    """Weights stored as (in_features, out_features); xavier-normal std depends
    only on fan_in + fan_out, so orientation does not matter."""
    ks = jax.random.split(key, 4)

    def xavier(k, fan_in, fan_out):
        std = math.sqrt(2.0 / (fan_in + fan_out))
        return std * jax.random.normal(k, (fan_in, fan_out), dtype=jnp.float32)

    return {
        "w1g": xavier(ks[0], input_dim, hidden_dim),
        "b1g": jnp.zeros((1, hidden_dim), jnp.float32),
        "w2g": xavier(ks[1], hidden_dim, output_dim),
        "b2g": jnp.zeros((1, output_dim), jnp.float32),
        "w1b": xavier(ks[2], input_dim, hidden_dim),
        "b1b": jnp.zeros((1, hidden_dim), jnp.float32),
        "w2b": xavier(ks[3], hidden_dim, output_dim),
        "b2b": jnp.zeros((1, output_dim), jnp.float32),
    }


def _reference(x, se, p):
    # pure-JAX reference for correctness checking
    h_g = jnp.maximum(se @ p["w1g"] + p["b1g"], 0.0)
    gamma = h_g @ p["w2g"] + p["b2g"]
    h_b = jnp.maximum(se @ p["w1b"] + p["b1b"], 0.0)
    beta = h_b @ p["w2b"] + p["b2b"]
    return gamma[:, :, None, None] * x + beta[:, :, None, None]


if __name__ == "__main__":
    B, C, Hh, Ww = 2, 4, 16, 16        # x shape (NCHW); output_dim == C
    input_dim, hidden_dim, output_dim = 32, 32, C

    key = jax.random.PRNGKey(0)
    k_x, k_se, k_p = jax.random.split(key, 3)

    x = jax.random.normal(k_x, (B, C, Hh, Ww), dtype=jnp.float32)
    sentence_embed = jax.random.normal(k_se, (B, input_dim), dtype=jnp.float32)
    params = init_affine_block_params(k_p, input_dim, hidden_dim, output_dim)

    out = affine_block(x, sentence_embed, params)
    out = jax.block_until_ready(out)

    ref = _reference(x, sentence_embed, params)
    assert out.shape == x.shape and out.dtype == x.dtype
    assert jnp.allclose(out, ref, atol=1e-5, rtol=1e-5), "mismatch vs reference"

    print("KERNEL_OK")
</pallas_src>

<mosaic_0001>
module attributes {stable_mosaic.version = 11 : i64} {
  func.func @_gamma_beta_kernel(%arg0: memref<2x32xf32, #tpu.memory_space<vmem>>, %arg1: memref<32x32xf32, #tpu.memory_space<vmem>>, %arg2: memref<1x32xf32, #tpu.memory_space<vmem>>, %arg3: memref<32x4xf32, #tpu.memory_space<vmem>>, %arg4: memref<1x4xf32, #tpu.memory_space<vmem>>, %arg5: memref<32x32xf32, #tpu.memory_space<vmem>>, %arg6: memref<1x32xf32, #tpu.memory_space<vmem>>, %arg7: memref<32x4xf32, #tpu.memory_space<vmem>>, %arg8: memref<1x4xf32, #tpu.memory_space<vmem>>, %arg9: memref<2x4xf32, #tpu.memory_space<vmem>>, %arg10: memref<2x4xf32, #tpu.memory_space<vmem>>) attributes {dimension_semantics = [], scalar_prefetch = 0 : i64, scratch_operands = 0 : i64, tpu.core_type = #tpu.core_type<tc>} {
    %c0 = arith.constant 0 : index
    %c0_0 = arith.constant 0 : index
    %0 = vector.load %arg0[%c0, %c0_0] : memref<2x32xf32, #tpu.memory_space<vmem>>, vector<2x32xf32>
    %c0_1 = arith.constant 0 : index
    %c0_2 = arith.constant 0 : index
    %1 = vector.load %arg1[%c0_1, %c0_2] : memref<32x32xf32, #tpu.memory_space<vmem>>, vector<32x32xf32>
    %cst = arith.constant dense<0.000000e+00> : vector<2x32xf32>
    %2 = tpu.matmul %0, %1, %cst {dimension_numbers = #tpu.dot_dimension_numbers<[1], [0], [0], [1], [0, 0, 1, 1], [], []>} : vector<2x32xf32>, vector<32x32xf32>, vector<2x32xf32> -> vector<2x32xf32>
    %c0_3 = arith.constant 0 : index
    %c0_4 = arith.constant 0 : index
    %3 = vector.load %arg2[%c0_3, %c0_4] : memref<1x32xf32, #tpu.memory_space<vmem>>, vector<1x32xf32>
    %4 = vector.broadcast %3 : vector<1x32xf32> to vector<2x32xf32>
    %5 = arith.addf %2, %4 : vector<2x32xf32>
    %cst_5 = arith.constant 0.000000e+00 : f32
    %6 = vector.broadcast %cst_5 : f32 to vector<2x32xf32>
    %7 = arith.maximumf %5, %6 : vector<2x32xf32>
    %c0_6 = arith.constant 0 : index
    %c0_7 = arith.constant 0 : index
    %8 = vector.load %arg3[%c0_6, %c0_7] : memref<32x4xf32, #tpu.memory_space<vmem>>, vector<32x4xf32>
    %cst_8 = arith.constant dense<0.000000e+00> : vector<2x4xf32>
    %9 = tpu.matmul %7, %8, %cst_8 {dimension_numbers = #tpu.dot_dimension_numbers<[1], [0], [0], [1], [0, 0, 1, 1], [], []>} : vector<2x32xf32>, vector<32x4xf32>, vector<2x4xf32> -> vector<2x4xf32>
    %c0_9 = arith.constant 0 : index
    %c0_10 = arith.constant 0 : index
    %10 = vector.load %arg4[%c0_9, %c0_10] : memref<1x4xf32, #tpu.memory_space<vmem>>, vector<1x4xf32>
    %11 = vector.broadcast %10 : vector<1x4xf32> to vector<2x4xf32>
    %12 = arith.addf %9, %11 : vector<2x4xf32>
    %c0_11 = arith.constant 0 : index
    %c0_12 = arith.constant 0 : index
    %13 = vector.load %arg9[%c0_11, %c0_12] : memref<2x4xf32, #tpu.memory_space<vmem>>, vector<2x4xf32>
    tpu.vector_store %arg9[%c0_11, %c0_12], %12 {strides = array<i32>} : memref<2x4xf32, #tpu.memory_space<vmem>>, vector<2x4xf32>,
    %c0_13 = arith.constant 0 : index
    %c0_14 = arith.constant 0 : index
    %14 = vector.load %arg5[%c0_13, %c0_14] : memref<32x32xf32, #tpu.memory_space<vmem>>, vector<32x32xf32>
    %cst_15 = arith.constant dense<0.000000e+00> : vector<2x32xf32>
    %15 = tpu.matmul %0, %14, %cst_15 {dimension_numbers = #tpu.dot_dimension_numbers<[1], [0], [0], [1], [0, 0, 1, 1], [], []>} : vector<2x32xf32>, vector<32x32xf32>, vector<2x32xf32> -> vector<2x32xf32>
    %c0_16 = arith.constant 0 : index
    %c0_17 = arith.constant 0 : index
    %16 = vector.load %arg6[%c0_16, %c0_17] : memref<1x32xf32, #tpu.memory_space<vmem>>, vector<1x32xf32>
    %17 = vector.broadcast %16 : vector<1x32xf32> to vector<2x32xf32>
    %18 = arith.addf %15, %17 : vector<2x32xf32>
    %cst_18 = arith.constant 0.000000e+00 : f32
    %19 = vector.broadcast %cst_18 : f32 to vector<2x32xf32>
    %20 = arith.maximumf %18, %19 : vector<2x32xf32>
    %c0_19 = arith.constant 0 : index
    %c0_20 = arith.constant 0 : index
    %21 = vector.load %arg7[%c0_19, %c0_20] : memref<32x4xf32, #tpu.memory_space<vmem>>, vector<32x4xf32>
    %cst_21 = arith.constant dense<0.000000e+00> : vector<2x4xf32>
    %22 = tpu.matmul %20, %21, %cst_21 {dimension_numbers = #tpu.dot_dimension_numbers<[1], [0], [0], [1], [0, 0, 1, 1], [], []>} : vector<2x32xf32>, vector<32x4xf32>, vector<2x4xf32> -> vector<2x4xf32>
    %c0_22 = arith.constant 0 : index
    %c0_23 = arith.constant 0 : index
    %23 = vector.load %arg8[%c0_22, %c0_23] : memref<1x4xf32, #tpu.memory_space<vmem>>, vector<1x4xf32>
    %24 = vector.broadcast %23 : vector<1x4xf32> to vector<2x4xf32>
    %25 = arith.addf %22, %24 : vector<2x4xf32>
    %c0_24 = arith.constant 0 : index
    %c0_25 = arith.constant 0 : index
    %26 = vector.load %arg10[%c0_24, %c0_25] : memref<2x4xf32, #tpu.memory_space<vmem>>, vector<2x4xf32>
    tpu.vector_store %arg10[%c0_24, %c0_25], %25 {strides = array<i32>} : memref<2x4xf32, #tpu.memory_space<vmem>>, vector<2x4xf32>,
    return
  }
}

</mosaic_0001>

<bundles_post_ra>
// kernel: tpu_custom_call.1
= control target key start
LH: loop header
LB: loop body
LE: loop exit
PB: predicated region body
PF: predicated region fallthrough
CT: control target
= control target key end

     0   :  { %16 = vsyncpa [#allocation3], 0  ;;  %v553_v3 = vmov 0.0|0.0   ;;  %vm554_vm0 = vmmov 0   ;;  %v555_v6 = vmov 0.0   ;;  %s710_s0 = inlined_call_operand.vmem [shape: f32[2,32], index: 0, kind: input, shape index: {}]   ;;  %s711_s1 = inlined_call_operand.vmem [shape: f32[32,32], index: 1, kind: input, shape index: {}]   ;;  %s712_s2 = inlined_call_operand.vmem [shape: f32[1,32], index: 2, kind: input, shape index: {}]   ;;  %s713_s3 = inlined_call_operand.vmem [shape: f32[32,4], index: 3, kind: input, shape index: {}]   ;;  %s714_s4 = inlined_call_operand.vmem [shape: f32[1,4], index: 4, kind: input, shape index: {}]   ;;  %s715_s5 = inlined_call_operand.vmem [shape: f32[32,32], index: 5, kind: input, shape index: {}]   ;;  %s716_s6 = inlined_call_operand.vmem [shape: f32[1,32], index: 6, kind: input, shape index: {}]   ;;  %s717_s7 = inlined_call_operand.vmem [shape: f32[32,4], index: 7, kind: input, shape index: {}]   ;;  %s718_s8 = inlined_call_operand.vmem [shape: f32[1,4], index: 8, kind: input, shape index: {}]   ;;  %s719_s9 = inlined_call_operand.hbm [shape: f32[2,4], index: 9, kind: output, shape index: {0}]   ;;  %s720_s10 = inlined_call_operand.hbm [shape: f32[2,4], index: 10, kind: output, shape index: {1}]  }
   0x1   :  { %v37_v0 = vld [vmem:[%s711_s1] sm:$0xff]  ;;  %v38_v1 = vld [vmem:[%s711_s1 + $0x8] sm:$0xff]  ;;  %v39_v2 = vld [vmem:[%s711_s1 + $0x10] sm:$0xff]  ;;  %476 = vmatprep.subr.bf16.mxu0 %v553_v3  ;;  %440 = vmatprep.mubr.msk.f32.mxu0 %vm554_vm0, %v555_v6 }
   0x2   :  { %v477_v4 = vpack.c.bf16 %v38_v1, %v37_v0  ;;  %v40_v5 = vld [vmem:[%s711_s1 + $0x18] sm:$0xff]  ;;  %482 = vmatprep.subr.bf16.mxu1 %v553_v3  ;;  %451 = vmatprep.mubr.msk.f32.mxu1 %vm554_vm0, %v555_v6  ;;  %v123_v8 = vld [vmem:[%s713_s3] sm:$0xff]  ;;  %v124_v9 = vld [vmem:[%s713_s3 + $0x8] sm:$0xff] }
   0x3   :  { %v480_v7 = vpack.c.bf16 %v40_v5, %v39_v2  ;;  %v209_v10 = vld [vmem:[%s715_s5] sm:$0xff]  ;;  %v210_v11 = vld [vmem:[%s715_s5 + $0x8] sm:$0xff]  ;;  %v483_v12 = vpack.c.bf16 %v124_v9, %v123_v8 }
   0x4   :  { %478 = vmatpush3.bf16.msra.mxu0 %v477_v4 }
   0x5   :  { %479 = vmatprep.subr.bf16.mxu0 %v553_v3 }
   0x6   :  { %17 = vsyncpa [#allocation5], 0  ;;  %484 = vmatpush3.bf16.msra.mxu1 %v483_v12  ;;  %v36_v13 = vld [vmem:[%s710_s0] sm:$0x3]  ;;  %vm48_vm1 = vcmask 261120   ;;  %v489_v14 = vpack.c.bf16 %v210_v11, %v209_v10  ;;  %v211_v15 = vld [vmem:[%s715_s5 + $0x10] sm:$0xff] }
   0x7   :  { %485 = vmatprep.subr.bf16.mxu1 %v553_v3  ;;  %v212_v16 = vld [vmem:[%s715_s5 + $0x18] sm:$0xff]  ;;  %v125_v18 = vld [vmem:[%s713_s3 + $0x10] sm:$0xff]  ;;  %v404_v21 = vld [vmem:[%s712_s2] ss:$0 sm:$0xff]  ;;  %s556_s26 = smov [#allocation2]   ;;  %vm207_vm2 = vcmask 25600  }
   0x8   :  { %481 = vmatpush3.bf16.msra.mxu0 %v480_v7  ;;  %v492_v17 = vpack.c.bf16 %v212_v16, %v211_v15  ;;  %v126_v19 = vld [vmem:[%s713_s3 + $0x18] sm:$0xff]  ;;  %v291_v22 = vld [vmem:[%s717_s7] sm:$0xff]  ;;  %v292_v23 = vld [vmem:[%s717_s7 + $0x8] sm:$0xff]  ;;  %s382_s27 = sshll.u32 %s556_s26, 4  ;;  %s383_s27 = int_to_ptr.vmem [resolvable:$true] %s382_s27 }
   0x9   :  { %488 = vmatprep.subr.bf16.mxu0 %v553_v3  ;;  %v486_v20 = vpack.c.bf16 %v126_v19, %v125_v18  ;;  %v495_v27 = vpack.c.bf16 %v292_v23, %v291_v22  ;;  %v293_v29 = vld [vmem:[%s717_s7 + $0x10] sm:$0xff]  ;;  %v294_v30 = vld [vmem:[%s717_s7 + $0x18] sm:$0xff]  ;;  %v408_v31 = vld [vmem:[%s716_s6] ss:$0 sm:$0xff]  ;;  %s505_s6 = scalar_lea.vmem %s383_s27, 32  ;;  %p510_p1 = scmp.lt.s32.totalorder %s383_s27, %s383_s27 }
   0xa   :  { %v498_v32 = vpack.c.bf16 %v294_v30, %v293_v29  ;;  %v406_v37 = vld [vmem:[%s714_s4] ss:$0 sm:$0xff]  ;;  %p506_p0 = scmp.ne.s32.totalorder %s383_s27, %s505_s6  ;;  %p511_p2 = scmp.lt.s32.totalorder %s505_s6, %s505_s6 }
   0xb   :  { %441 = vmatmul.mubr.msk.f32.vlgmr.msra.gmra.mrb[0].mxu0 %vm48_vm1, %v36_v13  ;;  %487 = vmatpush3.bf16.msra.mxu1 %v486_v20 }
   0xc   :  { %490 = vmatpush3.bf16.msra.mxu0 %v489_v14  ;;  %462 = vmatprep.mubr.msk.f32.mxu0 %vm554_vm0, %v555_v6  ;;  %p512_p3 = por %p511_p2, %p510_p1 }
   0xd   :  { %491 = vmatprep.subr.bf16.mxu0 %v553_v3  ;;  %494 = vmatprep.subr.bf16.mxu1 %v553_v3 }
   0xe   :  { %p513_p4 = pnand %p512_p3, %p506_p0 }
  0x10   :  { %493 = vmatpush3.bf16.msra.mxu0 %v492_v17 }
  0x13   :  { %463 = vmatmul.mubr.msk.f32.vlgmr.msra.gmra.mrb[2].mxu0 %vm48_vm1, %v36_v13 }
  0xde   :  { %v118_v24 = vpop.f32.mrb[0].mxu0 }
  0xdf   :  { %v119_v25 = vadd.f32 %v404_v21, %v118_v24  ;;  %v442_v26 = vpop.f32.mrb[1].mxu0 }
  0xe1   :  { %v122_v28 = vmax.f32 %v119_v25, 0.0 }
  0xe3   :  { %452 = vmatmul.mubr.msk.f32.vlgmr.msra.gmra.mrb[0].mxu1 %vm48_vm1, %v122_v28 }
  0xe4   :  { %496 = vmatpush3.bf16.msra.mxu1 %v495_v27  ;;  %473 = vmatprep.mubr.msk.f32.mxu1 %vm554_vm0, %v555_v6 }
  0xe5   :  { %497 = vmatprep.subr.bf16.mxu1 %v553_v3 }
  0xe6   :  { %v286_v33 = vpop.f32.mrb[2].mxu0 }
  0xe7   :  { %v287_v34 = vadd.f32 %v408_v31, %v286_v33  ;;  %v464_v35 = vpop.f32.mrb[3].mxu0 }
  0xe8   :  { %499 = vmatpush3.bf16.msra.mxu1 %v498_v32 }
  0xe9   :  { %v290_v36 = vmax.f32 %v287_v34, 0.0 }
  0xeb   :  { %474 = vmatmul.mubr.msk.f32.vlgmr.msra.gmra.mrb[2].mxu1 %vm48_vm1, %v290_v36 }
 0x1b6   :  { %v203_v38 = vpop.f32.mrb[0].mxu1 }
 0x1b7   :  { %v204_v39 = vadd.f32 %v406_v37, %v203_v38  ;;  %v453_v40 = vpop.f32.mrb[1].mxu1 }
 0x1b9   :  { %208 = vst.msk [vmem:[#allocation2] sm:$0x3] %vm207_vm2, %v204_v39 }
 0x1ba   :  { %516 = shalt.err (!%p513_p4)
}
 0x1bb   :  { %s517_s4 = scalar_lea.hbm %s719_s9, 32 }
 0x1bc   :  { %p518_p5 = scmp.ne.s32.totalorder %s719_s9, %s517_s4  ;;  %p521_p6 = scmp.lt.u32.totalorder %s517_s4, %s719_s9 }
 0x1be   :  { %p523_p7 = pnand %p521_p6, %p518_p5 }
 0x1c0   :  { %526 = shalt.err (!%p523_p7)
}
 0x1c1   :  { %385 = dma.vmem_to_hbm [thread:$0]  %s383_s27, 32, %s719_s9, [#allocation3]   ;;  %v410_v41 = vld [vmem:[%s718_s8] ss:$0 sm:$0xff]  ;;  %v371_v42 = vpop.f32.mrb[2].mxu1 }
 0x1c2   :  { %s557_s5 = smov [#allocation4]   ;;  %v372_v43 = vadd.f32 %v410_v41, %v371_v42  ;;  %v475_v44 = vpop.f32.mrb[3].mxu1 }
 0x1c3   :  { %s392_s17 = sshll.u32 %s557_s5, 4  ;;  %s393_s17 = int_to_ptr.vmem [resolvable:$true] %s392_s17 }
 0x1c4   :  { %375 = vst.msk [vmem:[#allocation4] sm:$0x3] %vm207_vm2, %v372_v43  ;;  %s527_s18 = scalar_lea.vmem %s393_s17, 32  ;;  %p532_p9 = scmp.lt.s32.totalorder %s393_s17, %s393_s17 }
 0x1c5   :  { %p528_p8 = scmp.ne.s32.totalorder %s393_s17, %s527_s18  ;;  %p533_p10 = scmp.lt.s32.totalorder %s527_s18, %s527_s18 }
 0x1c7   :  { %p534_p11 = por %p533_p10, %p532_p9 }
 0x1c9   :  { %p535_p12 = pnand %p534_p11, %p528_p8 }
 0x1cb   :  { %538 = shalt.err (!%p535_p12)
}
 0x1cc   :  { %s539_s20 = scalar_lea.hbm %s720_s10, 32 }
 0x1cd   :  { %p540_p13 = scmp.ne.s32.totalorder %s720_s10, %s539_s20  ;;  %p543_p0 = scmp.lt.u32.totalorder %s539_s20, %s720_s10 }
 0x1cf   :  { %p545_p1 = pnand %p543_p0, %p540_p13 }
 0x1d1   :  { %548 = shalt.err (!%p545_p1)
}
 0x1d2   :  { %395 = dma.vmem_to_hbm [thread:$0]  %s393_s17, 32, %s720_s10, [#allocation5]  }
 0x1d3   :  { %549 = dma.done.wait [#allocation3], 32  }
 0x1d4   :  { %550 = vsyncadd [#allocation3], 4294967264 }
 0x1d5   :  { %551 = dma.done.wait [#allocation5], 32  }
 0x1d6   :  { %552 = vsyncadd [#allocation5], 4294967264 }
 0x1d7   :  { %402 = vsyncpa [#allocation3], 1 }
 0x1d8   :  { %403 = vsyncpa [#allocation5], 1 }

</bundles_post_ra>
